<compile_context>
chip_gen: v7x
topology: tpu7x:2x2x1
jax: 0.10.0
libtpu: 0.0.40
codegen_flags: <defaults>
</compile_context>

<pallas_src>
import jax
import jax.numpy as jnp
import numpy as np
from jax.experimental import pallas as pl
from jax.experimental.pallas import tpu as pltpu


# ---------------------------------------------------------------------------
# Kernels
# ---------------------------------------------------------------------------

def _make_fused_kernel(C, inv_hw, use_mxu):
    """Whole SFconv for one batch element: GAP -> fc/fcs/softmax -> mix -> 1x1 conv."""

    def fused_kernel(low_ref, high_ref, wfct_ref, bfcr_ref, wh_ref, bh_ref,
                     wl_ref, bl_ref, wo_ref, bo_ref, out_ref):
        low = low_ref[...].astype(jnp.float32)     # (C, HWp)
        high = high_ref[...].astype(jnp.float32)   # (C, HWp)

        # --- global average pool of (low + high): add first, single lane reduce ---
        gap = jnp.sum(low + high, axis=-1, keepdims=True) * inv_hw          # (C, 1)

        # --- squeeze-excite attention: exact f32, VPU mul + XLU reduce only ---
        # fea_z = W_fc @ gap + b_fc, computed as a (1, d) row via a sublane reduce.
        fea_z = jnp.sum(wfct_ref[...] * gap, axis=0, keepdims=True) + bfcr_ref[...]   # (1, d)
        h_att = jnp.sum(wh_ref[...] * fea_z, axis=-1, keepdims=True) + bh_ref[...]    # (C, 1)
        l_att = jnp.sum(wl_ref[...] * fea_z, axis=-1, keepdims=True) + bl_ref[...]    # (C, 1)

        # joint softmax over the 2C concatenated channels (matches PyTorch dim=1)
        m = jnp.max(jnp.maximum(h_att, l_att), axis=0, keepdims=True)       # (1, 1)
        eh = jnp.exp(h_att - m)
        el = jnp.exp(l_att - m)
        denom = jnp.sum(eh + el, axis=0, keepdims=True)                      # (1, 1)
        att_h = eh / denom                                                   # (C, 1)
        att_l = el / denom

        # --- weighted mix + output 1x1 conv ---
        fea = high * att_h + low * att_l                                     # (C, HWp) f32
        wo = wo_ref[...]
        bo = bo_ref[...]                                                     # (C, 1) f32
        if use_mxu:
            # bf16 operands, f32 accumulation: single-pass MXU.
            out = jnp.dot(wo, fea.astype(wo.dtype),
                          preferred_element_type=jnp.float32) + bo
        else:
            # Tiny C (< 8): a handful of exact-f32 broadcast FMAs on the VPU.
            out = jnp.broadcast_to(bo, fea.shape)
            for ci in range(C):
                out = out + wo[:, ci:ci + 1] * fea[ci:ci + 1, :]
        out_ref[...] = out.astype(out_ref.dtype)

    return fused_kernel


def _gap_partial_kernel(low_ref, high_ref, acc_ref):
    """Per-(batch, split) partial sum of (low + high) over HW tiles (two-pass path)."""
    t = pl.program_id(2)

    @pl.when(t == 0)
    def _init():
        acc_ref[...] = jnp.zeros_like(acc_ref)

    emerge = low_ref[...].astype(jnp.float32) + high_ref[...].astype(jnp.float32)
    acc_ref[...] += jnp.sum(emerge, axis=-1, keepdims=True)


def _apply_folded_kernel(wh_ref, wl_ref, bo_ref, low_ref, high_ref, out_ref):
    """out = W_h_fold @ high + W_l_fold @ low + b  (attention already folded into W)."""
    wh = wh_ref[...]                                    # (C, C) bf16
    wl = wl_ref[...]
    high = high_ref[...].astype(wh.dtype)               # (C, T) bf16
    low = low_ref[...].astype(wl.dtype)
    acc = jnp.dot(wh, high, preferred_element_type=jnp.float32)
    acc = acc + jnp.dot(wl, low, preferred_element_type=jnp.float32)
    out_ref[...] = (acc + bo_ref[...]).astype(out_ref.dtype)


# ---------------------------------------------------------------------------
# Wrapper
# ---------------------------------------------------------------------------

def _fused_vmem_bytes(c, hwp, in_isz, out_isz):
    # double-buffered low/high + double-buffered out + ~5 f32 (C, HWp) temporaries
    return c * hwp * (4 * in_isz + 2 * out_isz + 5 * 4)


def _choose_hw_tile(hwp, c, in_isz, out_isz, budget=12 << 20):
    """Largest lane-dense tile dividing hwp whose double-buffered IO + f32 temps fit."""
    per_col = c * (4 * in_isz + 2 * out_isz + 3 * 4)
    n_lanes = hwp // 128
    best = 128
    for k in range(1, n_lanes + 1):
        if n_lanes % k == 0 and per_col * (128 * k) <= budget:
            best = 128 * k
    return best


def sfconv_pallas(low, high, params, *, force_two_pass=False, two_pass_hw_tile=None):
    """low, high: (B, C, HW) arrays (NCHW with spatial flattened). Returns same shape."""
    B, C, HW = low.shape
    d = params["w_fc"].shape[0]
    in_dt = low.dtype
    in_isz = np.dtype(in_dt).itemsize
    out_isz = in_isz
    f32 = jnp.float32
    inv_hw = 1.0 / HW
    use_mxu = C >= 8

    # --- pad HW to a lane-dense multiple of 128 (zeros do not affect the GAP sum) ---
    HWp = ((HW + 127) // 128) * 128
    if HWp != HW:
        pad = ((0, 0), (0, 0), (0, HWp - HW))
        low_p, high_p = jnp.pad(low, pad), jnp.pad(high, pad)
    else:
        low_p, high_p = low, high

    # --- small parameter tensors (f32) ---
    w_fc_t = params["w_fc"].T.astype(f32)                 # (C, d)
    b_fc_r = params["b_fc"].reshape(1, d).astype(f32)     # (1, d)
    w_h = params["w_h"].astype(f32)                       # (C, d)
    b_h = params["b_h"].reshape(C, 1).astype(f32)
    w_l = params["w_l"].astype(f32)                       # (C, d)
    b_l = params["b_l"].reshape(C, 1).astype(f32)
    w_out = params["w_out"].astype(f32)                   # (C, C)
    b_out = params["b_out"].reshape(C, 1).astype(f32)

    can_fuse = (not force_two_pass) and \
        _fused_vmem_bytes(C, HWp, in_isz, out_isz) <= (16 << 20)

    if can_fuse:
        # ---------------- single fused pass: one HBM read of low/high ----------------
        wo_pass = w_out.astype(jnp.bfloat16) if use_mxu else w_out
        out = pl.pallas_call(
            _make_fused_kernel(C, inv_hw, use_mxu),
            out_shape=jax.ShapeDtypeStruct((B, C, HWp), in_dt),
            grid=(B,),
            in_specs=[
                pl.BlockSpec((None, C, HWp), lambda b: (b, 0, 0)),   # low
                pl.BlockSpec((None, C, HWp), lambda b: (b, 0, 0)),   # high
                pl.BlockSpec((C, d), lambda b: (0, 0)),              # w_fc^T
                pl.BlockSpec((1, d), lambda b: (0, 0)),              # b_fc row
                pl.BlockSpec((C, d), lambda b: (0, 0)),              # w_h
                pl.BlockSpec((C, 1), lambda b: (0, 0)),              # b_h
                pl.BlockSpec((C, d), lambda b: (0, 0)),              # w_l
                pl.BlockSpec((C, 1), lambda b: (0, 0)),              # b_l
                pl.BlockSpec((C, C), lambda b: (0, 0)),              # w_out
                pl.BlockSpec((C, 1), lambda b: (0, 0)),              # b_out
            ],
            out_specs=pl.BlockSpec((None, C, HWp), lambda b: (b, 0, 0)),
            compiler_params=pltpu.CompilerParams(
                dimension_semantics=("parallel",),
                vmem_limit_bytes=32 << 20),
        )(low_p, high_p, w_fc_t, b_fc_r, w_h, b_h, w_l, b_l, wo_pass, b_out)
        return out[..., :HW] if HWp != HW else out

    # ------------------------- two-pass fallback (large HW) -------------------------
    if two_pass_hw_tile is not None:
        T = two_pass_hw_tile
        assert T % 128 == 0 and HWp % T == 0, "two_pass_hw_tile must tile padded HW"
    else:
        T = _choose_hw_tile(HWp, C, in_isz, out_isz)
    n_t = HWp // T
    n_split = 2 if (n_t >= 2 and n_t % 2 == 0) else 1      # keep both v7x TCs busy
    n_inner = n_t // n_split

    # pass 1: split GAP reduction -> (B, n_split, C, 1) partial sums
    gap_part = pl.pallas_call(
        _gap_partial_kernel,
        out_shape=jax.ShapeDtypeStruct((B, n_split, C, 1), jnp.float32),
        grid=(B, n_split, n_inner),
        in_specs=[
            pl.BlockSpec((None, C, T), lambda b, s, t: (b, 0, s * n_inner + t)),
            pl.BlockSpec((None, C, T), lambda b, s, t: (b, 0, s * n_inner + t)),
        ],
        out_specs=pl.BlockSpec((None, None, C, 1), lambda b, s, t: (b, s, 0, 0)),
        compiler_params=pltpu.CompilerParams(
            dimension_semantics=("parallel", "parallel", "arbitrary"),
            vmem_limit_bytes=32 << 20),
    )(low_p, high_p)

    # tiny attention math on (B, C) vectors: plain JAX, exact f32
    P = jax.lax.Precision.HIGHEST
    gap = jnp.sum(gap_part, axis=1)[..., 0] * inv_hw                      # (B, C)
    fea_z = jnp.dot(gap, w_fc_t, precision=P) + params["b_fc"].astype(f32)         # (B, d)
    h_att = jnp.dot(fea_z, w_h.T, precision=P) + params["b_h"].astype(f32)          # (B, C)
    l_att = jnp.dot(fea_z, w_l.T, precision=P) + params["b_l"].astype(f32)          # (B, C)
    att = jax.nn.softmax(jnp.concatenate([h_att, l_att], axis=-1), axis=-1)
    att_h, att_l = jnp.split(att, 2, axis=-1)                             # (B, C) each

    # fold attention into per-batch 1x1-conv weights -> apply kernel is pure MXU
    w_h_fold = (w_out[None, :, :] * att_h[:, None, :]).astype(jnp.bfloat16)  # (B, C, C)
    w_l_fold = (w_out[None, :, :] * att_l[:, None, :]).astype(jnp.bfloat16)  # (B, C, C)

    out = pl.pallas_call(
        _apply_folded_kernel,
        out_shape=jax.ShapeDtypeStruct((B, C, HWp), in_dt),
        grid=(B, n_t),
        in_specs=[
            pl.BlockSpec((None, C, C), lambda b, t: (b, 0, 0)),    # w_h_fold
            pl.BlockSpec((None, C, C), lambda b, t: (b, 0, 0)),    # w_l_fold
            pl.BlockSpec((C, 1), lambda b, t: (0, 0)),             # b_out
            pl.BlockSpec((None, C, T), lambda b, t: (b, 0, t)),    # low
            pl.BlockSpec((None, C, T), lambda b, t: (b, 0, t)),    # high
        ],
        out_specs=pl.BlockSpec((None, C, T), lambda b, t: (b, 0, t)),
        compiler_params=pltpu.CompilerParams(
            dimension_semantics=("parallel", "parallel"),
            vmem_limit_bytes=32 << 20),
    )(w_h_fold, w_l_fold, b_out, low_p, high_p)
    return out[..., :HW] if HWp != HW else out


# ---------------------------------------------------------------------------
# Pure-JAX reference (mirrors PyTorch SFconv.forward semantics)
# ---------------------------------------------------------------------------

def sfconv_ref(low, high, params):
    P = jax.lax.Precision.HIGHEST
    emerge = low + high
    gap = jnp.mean(emerge, axis=-1, keepdims=True)                                 # (B, C, 1)
    fea_z = jnp.einsum('dc,bcx->bdx', params["w_fc"], gap, precision=P) \
        + params["b_fc"][None, :, None]
    high_att = jnp.einsum('cd,bdx->bcx', params["w_h"], fea_z, precision=P) \
        + params["b_h"][None, :, None]
    low_att = jnp.einsum('cd,bdx->bcx', params["w_l"], fea_z, precision=P) \
        + params["b_l"][None, :, None]
    att = jnp.concatenate([high_att, low_att], axis=1)                             # (B, 2C, 1)
    att = jax.nn.softmax(att, axis=1)
    high_att, low_att = jnp.split(att, 2, axis=1)
    fea = high * high_att + low * low_att
    return jnp.einsum('oc,bcx->box', params["w_out"], fea, precision=P) \
        + params["b_out"][None, :, None]


def make_params(key, features, r=2, L=32):
    d = max(int(features / r), L)
    ks = jax.random.split(key, 8)
    scale = 0.1
    # PyTorch Conv2d(1x1) weight layout (out, in), biases as flat vectors.
    return {
        "w_fc": scale * jax.random.normal(ks[0], (d, features), jnp.float32),
        "b_fc": scale * jax.random.normal(ks[1], (d,), jnp.float32),
        "w_h": scale * jax.random.normal(ks[2], (features, d), jnp.float32),
        "b_h": scale * jax.random.normal(ks[3], (features,), jnp.float32),
        "w_l": scale * jax.random.normal(ks[4], (features, d), jnp.float32),
        "b_l": scale * jax.random.normal(ks[5], (features,), jnp.float32),
        "w_out": scale * jax.random.normal(ks[6], (features, features), jnp.float32),
        "b_out": scale * jax.random.normal(ks[7], (features,), jnp.float32),
    }


def _run_case(name, key, B, C, H, W, dtype, rtol, atol,
              force_two_pass=False, hw_tile=None):
    k_low, k_high, k_par = jax.random.split(key, 3)
    low = jax.random.normal(k_low, (B, C, H * W), jnp.float32).astype(dtype)
    high = jax.random.normal(k_high, (B, C, H * W), jnp.float32).astype(dtype)
    params = make_params(k_par, C)
    out = sfconv_pallas(low, high, params,
                        force_two_pass=force_two_pass, two_pass_hw_tile=hw_tile)
    jax.block_until_ready(out)
    ref = sfconv_ref(low.astype(jnp.float32), high.astype(jnp.float32), params)
    np.testing.assert_allclose(np.asarray(out, dtype=np.float32), np.asarray(ref),
                               rtol=rtol, atol=atol, err_msg=name)


if __name__ == "__main__":
    key = jax.random.PRNGKey(0)
    keys = jax.random.split(key, 5)

    # 1) fused path, tiny C (exact unrolled VPU 1x1 conv), f32 -- tight tolerance.
    _run_case("fused_small_c_f32", keys[0], 2, 4, 16, 16, jnp.float32, 1e-4, 1e-5)
    # 2) fused path with HW not a multiple of 128 (lane-padding path), f32.
    _run_case("fused_pad_f32", keys[1], 2, 4, 10, 10, jnp.float32, 1e-4, 1e-5)
    # 3) fused path, C=32 -> MXU 1x1 conv with bf16 operands / f32 accumulation.
    _run_case("fused_mxu_f32", keys[2], 1, 32, 64, 64, jnp.float32, 2e-2, 5e-3)
    # 4) fused path with bf16 activations in HBM (halves memory traffic).
    _run_case("fused_bf16", keys[3], 2, 4, 16, 16, jnp.bfloat16, 3e-2, 3e-2)
    # 5) forced two-pass fallback: split GAP reduction + folded-weight MXU apply.
    _run_case("two_pass_bf16", keys[4], 2, 32, 32, 32, jnp.bfloat16, 3e-2, 3e-2,
              force_two_pass=True, hw_tile=256)

    print("KERNEL_OK")
</pallas_src>

<mosaic_0001>
module attributes {stable_mosaic.version = 11 : i64} {
  func.func @fused_kernel(%arg0: i32, %arg1: memref<1x4x256xf32, #tpu.memory_space<vmem>>, %arg2: memref<1x4x256xf32, #tpu.memory_space<vmem>>, %arg3: memref<4x32xf32, #tpu.memory_space<vmem>>, %arg4: memref<1x32xf32, #tpu.memory_space<vmem>>, %arg5: memref<4x32xf32, #tpu.memory_space<vmem>>, %arg6: memref<4x1xf32, #tpu.memory_space<vmem>>, %arg7: memref<4x32xf32, #tpu.memory_space<vmem>>, %arg8: memref<4x1xf32, #tpu.memory_space<vmem>>, %arg9: memref<4x4xf32, #tpu.memory_space<vmem>>, %arg10: memref<4x1xf32, #tpu.memory_space<vmem>>, %arg11: memref<1x4x256xf32, #tpu.memory_space<vmem>>) attributes {dimension_semantics = [#tpu.dimension_semantics<parallel>], iteration_bounds = array<i64: 2>, scalar_prefetch = 0 : i64, scratch_operands = 0 : i64, tpu.core_type = #tpu.core_type<tc>, window_params = [{transform_indices = @transform_0, window_bounds = array<i64: 1, 4, 256>}, {transform_indices = @transform_1, window_bounds = array<i64: 1, 4, 256>}, {pipeline_mode = #tpu.pipeline_mode<synchronous>, transform_indices = @transform_2, window_bounds = array<i64: 4, 32>}, {pipeline_mode = #tpu.pipeline_mode<synchronous>, transform_indices = @transform_3, window_bounds = array<i64: 1, 32>}, {pipeline_mode = #tpu.pipeline_mode<synchronous>, transform_indices = @transform_4, window_bounds = array<i64: 4, 32>}, {pipeline_mode = #tpu.pipeline_mode<synchronous>, transform_indices = @transform_5, window_bounds = array<i64: 4, 1>}, {pipeline_mode = #tpu.pipeline_mode<synchronous>, transform_indices = @transform_6, window_bounds = array<i64: 4, 32>}, {pipeline_mode = #tpu.pipeline_mode<synchronous>, transform_indices = @transform_7, window_bounds = array<i64: 4, 1>}, {pipeline_mode = #tpu.pipeline_mode<synchronous>, transform_indices = @transform_8, window_bounds = array<i64: 4, 4>}, {pipeline_mode = #tpu.pipeline_mode<synchronous>, transform_indices = @transform_9, window_bounds = array<i64: 4, 1>}, {transform_indices = @transform_10, window_bounds = array<i64: 1, 4, 256>}]} {
    %c0 = arith.constant 0 : index
    %c0_0 = arith.constant 0 : index
    %c0_1 = arith.constant 0 : index
    %0 = vector.load %arg1[%c0, %c0_0, %c0_1] : memref<1x4x256xf32, #tpu.memory_space<vmem>>, vector<1x4x256xf32>
    %1 = vector.shape_cast %0 : vector<1x4x256xf32> to vector<4x256xf32>
    %c0_2 = arith.constant 0 : index
    %c0_3 = arith.constant 0 : index
    %c0_4 = arith.constant 0 : index
    %2 = vector.load %arg2[%c0_2, %c0_3, %c0_4] : memref<1x4x256xf32, #tpu.memory_space<vmem>>, vector<1x4x256xf32>
    %3 = vector.shape_cast %2 : vector<1x4x256xf32> to vector<4x256xf32>
    %4 = arith.addf %1, %3 : vector<4x256xf32>
    %cst = arith.constant dense<0.000000e+00> : vector<4xf32>
    %5 = vector.multi_reduction <add>, %4, %cst [1] : vector<4x256xf32> to vector<4xf32>
    %6 = vector.shape_cast %5 : vector<4xf32> to vector<4x1xf32>
    %cst_5 = arith.constant 3.906250e-03 : f32
    %7 = vector.broadcast %cst_5 : f32 to vector<4x1xf32>
    %8 = arith.mulf %6, %7 : vector<4x1xf32>
    %c0_6 = arith.constant 0 : index
    %c0_7 = arith.constant 0 : index
    %9 = vector.load %arg3[%c0_6, %c0_7] : memref<4x32xf32, #tpu.memory_space<vmem>>, vector<4x32xf32>
    %10 = vector.broadcast %8 : vector<4x1xf32> to vector<4x32xf32>
    %11 = arith.mulf %9, %10 : vector<4x32xf32>
    %cst_8 = arith.constant dense<0.000000e+00> : vector<32xf32>
    %12 = vector.multi_reduction <add>, %11, %cst_8 [0] : vector<4x32xf32> to vector<32xf32>
    %13 = vector.shape_cast %12 : vector<32xf32> to vector<1x32xf32>
    %c0_9 = arith.constant 0 : index
    %c0_10 = arith.constant 0 : index
    %14 = vector.load %arg4[%c0_9, %c0_10] : memref<1x32xf32, #tpu.memory_space<vmem>>, vector<1x32xf32>
    %15 = arith.addf %13, %14 : vector<1x32xf32>
    %c0_11 = arith.constant 0 : index
    %c0_12 = arith.constant 0 : index
    %16 = vector.load %arg5[%c0_11, %c0_12] : memref<4x32xf32, #tpu.memory_space<vmem>>, vector<4x32xf32>
    %17 = vector.broadcast %15 : vector<1x32xf32> to vector<4x32xf32>
    %18 = arith.mulf %16, %17 : vector<4x32xf32>
    %cst_13 = arith.constant dense<0.000000e+00> : vector<4xf32>
    %19 = vector.multi_reduction <add>, %18, %cst_13 [1] : vector<4x32xf32> to vector<4xf32>
    %20 = vector.shape_cast %19 : vector<4xf32> to vector<4x1xf32>
    %c0_14 = arith.constant 0 : index
    %c0_15 = arith.constant 0 : index
    %21 = vector.load %arg6[%c0_14, %c0_15] : memref<4x1xf32, #tpu.memory_space<vmem>>, vector<4x1xf32>
    %22 = arith.addf %20, %21 : vector<4x1xf32>
    %c0_16 = arith.constant 0 : index
    %c0_17 = arith.constant 0 : index
    %23 = vector.load %arg7[%c0_16, %c0_17] : memref<4x32xf32, #tpu.memory_space<vmem>>, vector<4x32xf32>
    %24 = vector.broadcast %15 : vector<1x32xf32> to vector<4x32xf32>
    %25 = arith.mulf %23, %24 : vector<4x32xf32>
    %cst_18 = arith.constant dense<0.000000e+00> : vector<4xf32>
    %26 = vector.multi_reduction <add>, %25, %cst_18 [1] : vector<4x32xf32> to vector<4xf32>
    %27 = vector.shape_cast %26 : vector<4xf32> to vector<4x1xf32>
    %c0_19 = arith.constant 0 : index
    %c0_20 = arith.constant 0 : index
    %28 = vector.load %arg8[%c0_19, %c0_20] : memref<4x1xf32, #tpu.memory_space<vmem>>, vector<4x1xf32>
    %29 = arith.addf %27, %28 : vector<4x1xf32>
    %30 = arith.maximumf %22, %29 : vector<4x1xf32>
    %cst_21 = arith.constant dense<0xFF800000> : vector<1xf32>
    %31 = vector.multi_reduction <maximumf>, %30, %cst_21 [0] : vector<4x1xf32> to vector<1xf32>
    %32 = vector.shape_cast %31 : vector<1xf32> to vector<1x1xf32>
    %33 = vector.broadcast %32 : vector<1x1xf32> to vector<4x1xf32>
    %34 = arith.subf %22, %33 : vector<4x1xf32>
    %35 = math.exp %34 : vector<4x1xf32>
    %36 = vector.broadcast %32 : vector<1x1xf32> to vector<4x1xf32>
    %37 = arith.subf %29, %36 : vector<4x1xf32>
    %38 = math.exp %37 : vector<4x1xf32>
    %39 = arith.addf %35, %38 : vector<4x1xf32>
    %cst_22 = arith.constant dense<0.000000e+00> : vector<1xf32>
    %40 = vector.multi_reduction <add>, %39, %cst_22 [0] : vector<4x1xf32> to vector<1xf32>
    %41 = vector.shape_cast %40 : vector<1xf32> to vector<1x1xf32>
    %42 = vector.broadcast %41 : vector<1x1xf32> to vector<4x1xf32>
    %43 = arith.divf %35, %42 : vector<4x1xf32>
    %44 = vector.broadcast %41 : vector<1x1xf32> to vector<4x1xf32>
    %45 = arith.divf %38, %44 : vector<4x1xf32>
    %46 = vector.broadcast %43 : vector<4x1xf32> to vector<4x256xf32>
    %47 = arith.mulf %3, %46 : vector<4x256xf32>
    %48 = vector.broadcast %45 : vector<4x1xf32> to vector<4x256xf32>
    %49 = arith.mulf %1, %48 : vector<4x256xf32>
    %50 = arith.addf %47, %49 : vector<4x256xf32>
    %c0_23 = arith.constant 0 : index
    %c0_24 = arith.constant 0 : index
    %51 = vector.load %arg9[%c0_23, %c0_24] : memref<4x4xf32, #tpu.memory_space<vmem>>, vector<4x4xf32>
    %c0_25 = arith.constant 0 : index
    %c0_26 = arith.constant 0 : index
    %52 = vector.load %arg10[%c0_25, %c0_26] : memref<4x1xf32, #tpu.memory_space<vmem>>, vector<4x1xf32>
    %53 = vector.shape_cast %52 : vector<4x1xf32> to vector<4x1xf32>
    %54 = vector.broadcast %53 : vector<4x1xf32> to vector<4x256xf32>
    %55 = vector.extract_strided_slice %51 {offsets = [0, 0], sizes = [4, 1], strides = [1, 1]} : vector<4x4xf32> to vector<4x1xf32>
    %56 = vector.extract_strided_slice %50 {offsets = [0, 0], sizes = [1, 256], strides = [1, 1]} : vector<4x256xf32> to vector<1x256xf32>
    %57 = vector.broadcast %55 : vector<4x1xf32> to vector<4x256xf32>
    %58 = vector.broadcast %56 : vector<1x256xf32> to vector<4x256xf32>
    %59 = arith.mulf %57, %58 : vector<4x256xf32>
    %60 = arith.addf %54, %59 : vector<4x256xf32>
    %61 = vector.extract_strided_slice %51 {offsets = [0, 1], sizes = [4, 1], strides = [1, 1]} : vector<4x4xf32> to vector<4x1xf32>
    %62 = vector.extract_strided_slice %50 {offsets = [1, 0], sizes = [1, 256], strides = [1, 1]} : vector<4x256xf32> to vector<1x256xf32>
    %63 = vector.broadcast %61 : vector<4x1xf32> to vector<4x256xf32>
    %64 = vector.broadcast %62 : vector<1x256xf32> to vector<4x256xf32>
    %65 = arith.mulf %63, %64 : vector<4x256xf32>
    %66 = arith.addf %60, %65 : vector<4x256xf32>
    %67 = vector.extract_strided_slice %51 {offsets = [0, 2], sizes = [4, 1], strides = [1, 1]} : vector<4x4xf32> to vector<4x1xf32>
    %68 = vector.extract_strided_slice %50 {offsets = [2, 0], sizes = [1, 256], strides = [1, 1]} : vector<4x256xf32> to vector<1x256xf32>
    %69 = vector.broadcast %67 : vector<4x1xf32> to vector<4x256xf32>
    %70 = vector.broadcast %68 : vector<1x256xf32> to vector<4x256xf32>
    %71 = arith.mulf %69, %70 : vector<4x256xf32>
    %72 = arith.addf %66, %71 : vector<4x256xf32>
    %73 = vector.extract_strided_slice %51 {offsets = [0, 3], sizes = [4, 1], strides = [1, 1]} : vector<4x4xf32> to vector<4x1xf32>
    %74 = vector.extract_strided_slice %50 {offsets = [3, 0], sizes = [1, 256], strides = [1, 1]} : vector<4x256xf32> to vector<1x256xf32>
    %75 = vector.broadcast %73 : vector<4x1xf32> to vector<4x256xf32>
    %76 = vector.broadcast %74 : vector<1x256xf32> to vector<4x256xf32>
    %77 = arith.mulf %75, %76 : vector<4x256xf32>
    %78 = arith.addf %72, %77 : vector<4x256xf32>
    %c0_27 = arith.constant 0 : index
    %c0_28 = arith.constant 0 : index
    %c0_29 = arith.constant 0 : index
    %79 = vector.load %arg11[%c0_27, %c0_28, %c0_29] : memref<1x4x256xf32, #tpu.memory_space<vmem>>, vector<1x4x256xf32>
    %80 = vector.shape_cast %79 : vector<1x4x256xf32> to vector<4x256xf32>
    %81 = vector.shape_cast %78 : vector<4x256xf32> to vector<1x4x256xf32>
    tpu.vector_store %arg11[%c0_27, %c0_28, %c0_29], %81 {strides = array<i32>} : memref<1x4x256xf32, #tpu.memory_space<vmem>>, vector<1x4x256xf32>,
    return
  }
  func.func @transform_0(%arg0: i32) -> (i32, i32, i32) {
    %c0_i32 = arith.constant 0 : i32
    %c0_i32_0 = arith.constant 0 : i32
    %c0_i32_1 = arith.constant 0 : i32
    return %arg0, %c0_i32, %c0_i32_0 : i32, i32, i32
  }
  func.func @transform_1(%arg0: i32) -> (i32, i32, i32) {
    %c0_i32 = arith.constant 0 : i32
    %c0_i32_0 = arith.constant 0 : i32
    %c0_i32_1 = arith.constant 0 : i32
    return %arg0, %c0_i32, %c0_i32_0 : i32, i32, i32
  }
  func.func @transform_2(%arg0: i32) -> (i32, i32) {
    %c0_i32 = arith.constant 0 : i32
    %c0_i32_0 = arith.constant 0 : i32
    %c0_i32_1 = arith.constant 0 : i32
    return %c0_i32, %c0_i32_0 : i32, i32
  }
  func.func @transform_3(%arg0: i32) -> (i32, i32) {
    %c0_i32 = arith.constant 0 : i32
    %c0_i32_0 = arith.constant 0 : i32
    %c0_i32_1 = arith.constant 0 : i32
    return %c0_i32, %c0_i32_0 : i32, i32
  }
  func.func @transform_4(%arg0: i32) -> (i32, i32) {
    %c0_i32 = arith.constant 0 : i32
    %c0_i32_0 = arith.constant 0 : i32
    %c0_i32_1 = arith.constant 0 : i32
    return %c0_i32, %c0_i32_0 : i32, i32
  }
  func.func @transform_5(%arg0: i32) -> (i32, i32) {
    %c0_i32 = arith.constant 0 : i32
    %c0_i32_0 = arith.constant 0 : i32
    %c0_i32_1 = arith.constant 0 : i32
    return %c0_i32, %c0_i32_0 : i32, i32
  }
  func.func @transform_6(%arg0: i32) -> (i32, i32) {
    %c0_i32 = arith.constant 0 : i32
    %c0_i32_0 = arith.constant 0 : i32
    %c0_i32_1 = arith.constant 0 : i32
    return %c0_i32, %c0_i32_0 : i32, i32
  }
  func.func @transform_7(%arg0: i32) -> (i32, i32) {
    %c0_i32 = arith.constant 0 : i32
    %c0_i32_0 = arith.constant 0 : i32
    %c0_i32_1 = arith.constant 0 : i32
    return %c0_i32, %c0_i32_0 : i32, i32
  }
  func.func @transform_8(%arg0: i32) -> (i32, i32) {
    %c0_i32 = arith.constant 0 : i32
    %c0_i32_0 = arith.constant 0 : i32
    %c0_i32_1 = arith.constant 0 : i32
    return %c0_i32, %c0_i32_0 : i32, i32
  }
  func.func @transform_9(%arg0: i32) -> (i32, i32) {
    %c0_i32 = arith.constant 0 : i32
    %c0_i32_0 = arith.constant 0 : i32
    %c0_i32_1 = arith.constant 0 : i32
    return %c0_i32, %c0_i32_0 : i32, i32
  }
  func.func @transform_10(%arg0: i32) -> (i32, i32, i32) {
    %c0_i32 = arith.constant 0 : i32
    %c0_i32_0 = arith.constant 0 : i32
    %c0_i32_1 = arith.constant 0 : i32
    return %arg0, %c0_i32, %c0_i32_0 : i32, i32, i32
  }
}

</mosaic_0001>

<bundles_post_ra>
// kernel: tpu_custom_call.1
= control target key start
LH: loop header
LB: loop body
LE: loop exit
PB: predicated region body
PF: predicated region fallthrough
CT: control target
= control target key end

     0   :  { %15 = vsyncpa [#allocation3], 0  ;;  %s1173_s0 = inlined_call_operand.hbm [shape: f32[2,4,256], index: 0, kind: input, shape index: {}]   ;;  %s1174_s1 = inlined_call_operand.vmem [shape: f32[2,4,256], index: 1, kind: input, shape index: {}]   ;;  %s1175_s2 = inlined_call_operand.vmem [shape: f32[4,32], index: 2, kind: input, shape index: {}]   ;;  %s1176_s3 = inlined_call_operand.vmem [shape: f32[1,32], index: 3, kind: input, shape index: {}]   ;;  %s1177_s4 = inlined_call_operand.vmem [shape: f32[4,32], index: 4, kind: input, shape index: {}]   ;;  %s1178_s5 = inlined_call_operand.vmem [shape: f32[4,1], index: 5, kind: input, shape index: {}]   ;;  %s1179_s6 = inlined_call_operand.vmem [shape: f32[4,32], index: 6, kind: input, shape index: {}]   ;;  %s1180_s7 = inlined_call_operand.vmem [shape: f32[4,1], index: 7, kind: input, shape index: {}]   ;;  %s1181_s8 = inlined_call_operand.vmem [shape: f32[4,4], index: 8, kind: input, shape index: {}]   ;;  %s1182_s9 = inlined_call_operand.vmem [shape: f32[4,1], index: 9, kind: input, shape index: {}]   ;;  %s1183_s10 = inlined_call_operand.hbm [shape: f32[2,4,256], index: 10, kind: output, shape index: {}]  }
   0x1   :  { %17 = vsyncpa [#allocation3 + $0x1], 0 }
   0x2   :  { %18 = vsyncpa [#allocation4], 0 }
   0x3   :  { %20 = vsyncpa [#allocation4 + $0x1], 0  ;;  %s949_s13 = smov 0   ;;  %s951_s14 = smov 0  }
   0x4   :  { %s953_s15 = smov 0   ;;  %s955_s16 = smov 0  }
   0x5 LB: > { %s970_s17 = sadd.s32 4294967295, %s885_s16   ;;  %s707_s18 = sadd.s32 4294967294, %s885_s16   ;;  %s885_s16 = sphi %s955_s16, %s1200_s16   ;;  %s881_s15 = sphi %s953_s15, %s1199_s15   ;;  %s877_s14 = sphi %s951_s14, %s1198_s14   ;;  %s873_s13 = sphi %s949_s13, %s1197_s13  }
   0x6   : > { %s974_s19 = sadd.s32 1, %s885_s16   ;;  %s33_s20 = sadd.s32 1, %s881_s15 }
   0x7   : > { %s30_s21 = ssub.s32 %s885_s16, %s974_s19  ;;  %p40_p0 = scmp.ne.s32.totalorder %s881_s15, %s877_s14 }
   0x8   : > { %p31_p1 = scmp.eq.s32.totalorder %s30_s21, 0  ;;  %p41_p2 = scmp.eq.s32.totalorder %s885_s16, 0 }
   0x9   : > { %p46_p3 = scmp.ne.s32.totalorder %s877_s14, %s873_s13  ;;  %p47_p4 = scmp.eq.s32.totalorder %s970_s17, 0 }
   0xa   : > { %s986_s22 = scalar_select %p31_p1, %s881_s15, %s33_s20  }
   0xb   : > { %p988_p5 = por %p41_p2, %p40_p0  ;;  %p992_p6 = por %p47_p4, %p46_p3 }
   0xc   : > { %1185 = sst [smem:[#allocation8_spill]] %s986_s22  ;;  %p264_p7 = scmp.eq.s32.totalorder %s970_s17, 1 }
   0xd   : > { %p270_p8 = scmp.eq.s32.totalorder %s707_s18, 1  ;;  %p738_p10 = scmp.lt.s32.totalorder %s885_s16, 2 }
   0xe   : > { %p999_p11 = por %p264_p7, %p40_p0  ;;  %s314_s27 = sand.u32 1, %s881_s15  }
   0xf   : > { %p1003_p12 = por %p270_p8, %p46_p3  ;;  %s723_s28 = sshll.u32 %s885_s16, 7 }
  0x10   : > { %s1188_s25 = scalar_select %p999_p11, 1, 0 }
  0x11   : > { %s1189_s26 = scalar_select %p1003_p12, 1, 0 }
  0x12   : > { %s710_s29 = sshll.u32 %s314_s27, 3  ;;  %s1012_s12 = scalar_lea.hbm %s1173_s0, %s723_s28 }
  0x13   : > { %s318_s18 = scalar_lea.vmem [#allocation2], %s710_s29  ;;  %p1016_p13 = pnand %p738_p10, %p988_p5 }
  0x14   : > { %s326_s20 = sshll.u32 %s318_s18, 4  ;;  %s315_s30 = scalar_lea.sflag [#allocation3], %s314_s27  ;;  %s1020_s20 = int_to_ptr.vmem [resolvable:$true] %s326_s20 }
  0x15   : > { %s789_s28 = scalar_lea.hbm %s1012_s12, 128  ;;  %p791_p3 = pneg %p1016_p13 }
  0x16   : > { %p790_p2 = scmp.ne.s32.totalorder %s1012_s12, %s789_s28  ;;  %s794_s11 = scalar_lea.hbm %s1173_s0, 256 }
  0x17   : > { %p795_p5 = scmp.lt.u32.totalorder %s1012_s12, %s1173_s0  ;;  %p796_p8 = scmp.lt.u32.totalorder %s794_s11, %s789_s28 }
  0x18   : > { %p792_p4 = pnand %p791_p3, %p790_p2  ;;  %p798_p9 = scmp.lt.u32.totalorder %s789_s28, %s1012_s12 }
  0x19   : > { %p797_p10 = por %p796_p8, %p795_p5 }
  0x1a   : > { %p793_p7 = pneg %p792_p4 }
  0x1b   : > { %p799_p0 = por %p798_p9, %p797_p10 }
  0x1d   : > { %p800_p1 = pnand %p799_p0, %p793_p7 }
  0x1f   : > { %803 = shalt.err (!%p800_p1)
}
  0x20   : > { %s804_s27 = scalar_lea.vmem %s1020_s20, 128  ;;  %s887_s23 = smov [#allocation2]  }
  0x21   : > { %p805_p2 = scmp.ne.s32.totalorder %s1020_s20, %s804_s27  ;;  %s809_s29 = sshll.u32 %s887_s23, 4  ;;  %s810_s29 = int_to_ptr.vmem [resolvable:$false] %s809_s29 }
  0x22   : > { %s811_s22 = scalar_lea.vmem %s810_s29, 256  ;;  %p812_p11 = scmp.lt.s32.totalorder %s1020_s20, %s810_s29 }
  0x23   : > { %p807_p4 = pnand %p805_p2, %p791_p3  ;;  %p813_p5 = scmp.lt.s32.totalorder %s811_s22, %s804_s27 }
  0x25   : > { %p808_p12 = pneg %p807_p4  ;;  %p814_p8 = por %p813_p5, %p812_p11 }
  0x27   : > { %p815_p9 = pnand %p814_p8, %p808_p12 }
  0x29   : > { %818 = shalt.err (!%p815_p9)
}
  0x2a   : > { %733 = dma.hbm_to_vmem [thread:$0]  (!%p1016_p13), %s1012_s12, 128, %s1020_s20, %s315_s30  }
  0x2b   : > { %p1191_p0 = scmp.lt.s32.totalorder %s885_s16, 3  ;;  %p1192_p1 = scmp.ge.s32.totalorder %s885_s16, 1 }
  0x2d   : > { %p340_p3 = pnand %p1192_p1, %p1191_p0 }
  0x2e   : > { %s1054_s28 = sand.u32 (!%p340_p3), 1, %s877_s14  }
  0x2f   : > { %343 = sbr.rel (%p340_p3) target bundleno = 609 (0x261), region = 60  ;;  %s714_s11 = sshll.u32 (!%p340_p3), %s1054_s28, 3 }
  0x30   : > { %s346_s18 = scalar_lea.sflag (!%p340_p3), [#allocation3], %s1054_s28  ;;  %s349_s21 = scalar_lea.vmem (!%p340_p3), [#allocation2], %s714_s11 }
  0x36   : > { %864 = dma.done.wait (%p992_p6), %s346_s18, 128  }
  0x37   : > { %866 = vsyncadd (%p992_p6), %s346_s18, 4294967168  ;;  %p391_p11 = scmp.lt.s32.totalorder %s970_s17, 1  ;;  %v1069_v0 = vld [vmem:[%s349_s21] sm:$0xff]  ;;  %vm402_vm0 = vcmask 1043456   ;;  %vm411_vm1 = vcmask 257024   ;;  %v422_v14 = vlaneseq  ;;  %v888_v30 = vmov 0  }
  0x38   : > { %v409_v7 = vld [vmem:[%s1175_s2] sm:$0xf]  ;;  %778 = vset.pattern.permute.xlu0 %v888_v30  ;;  %777 = vset.pattern.permute.xlu1 %v888_v30  ;;  %vm440_vm2 = vcmask 3072   ;;  %v889_v63 = vmov 3   ;;  %s390_s30 = scalar_lea.vmem [#allocation5], %s714_s11  ;;  %s611_s22 = scalar_lea.sflag [#allocation4], %s1054_s28 }
  0x39   : > { %s392_s12 = scalar_select %p391_p11, %s970_s17, 1  ;;  %v1079_v17 = vshrl.u32 %v422_v14, 7  ;;  %v419_v19 = vld [vmem:[%s1176_s3] sm:$0x1] }
  0x3a   : > { %v432_v23 = vld [vmem:[%s1179_s6] sm:$0xf]  ;;  %s625_s27 = sshll.u32 %s390_s30, 4  ;;  %p1193_p12 = scmp.ne.s32.totalorder %s1188_s25, 0  ;;  %s1131_s27 = int_to_ptr.vmem [resolvable:$true] %s625_s27 }
  0x3b   : > { %s724_s20 = sshll.u32 %s392_s12, 3  ;;  %v1085_v21 = vsub.s32 0, %v1079_v17  ;;  %v421_v24 = vld [vmem:[%s1177_s4] sm:$0xf]  ;;  %s819_s18 = scalar_lea.vmem %s1131_s27, 128 }
  0x3c   : > { %s395_s23 = scalar_lea.vmem %s1174_s1, %s724_s20  ;;  %v437_v31 = vld [vmem:[%s1180_s7] sm:$0xf]  ;;  %s725_s20 = sshll.u32 %s970_s17, 7 }
  0x3d   : > { %v1071_v1 = vld [vmem:[%s395_s23] sm:$0xff]  ;;  %s1129_s29 = scalar_lea.hbm %s1183_s10, %s725_s20  ;;  %p820_p6 = scmp.ne.s32.totalorder %s1131_s27, %s819_s18 }
  0x3e   : > { %v398_v2 = vadd.f32 %v1071_v1, %v1069_v0  ;;  %v430_v32 = vld [vmem:[%s1178_s5] sm:$0xf]  ;;  %s893_s17 = smov [#allocation5]  }
  0x3f   : > { %v492_v62 = vld [vmem:[%s1181_s8] sm:$0xf]  ;;  %p821_p13 = pnand %p820_p6, %p1193_p12  ;;  %s823_s11 = sshll.u32 %s893_s17, 4  ;;  %s824_s11 = int_to_ptr.vmem [resolvable:$false] %s823_s11 }
  0x40   : > { %v400_v3 = vcombine.high %v398_v2, %v398_v2  ;;  %v403_v4 = vsel %vm402_vm0, %v398_v2, 0.0  ;;  %v493_v2 = vld [vmem:[%s1182_s9] sm:$0xf]  ;;  %s825_s21 = scalar_lea.vmem %s824_s11, 256  ;;  %p826_p10 = scmp.lt.s32.totalorder %s1131_s27, %s824_s11 }
  0x41   : > { %p822_p7 = pneg %p821_p13  ;;  %p827_p2 = scmp.lt.s32.totalorder %s825_s21, %s819_s18 }
  0x42   : > { %v404_v5 = vsel %vm402_vm0, %v400_v3, 0.0  ;;  %v890_v3 = vmov 1  }
  0x43   : > { %v405_v6 = vadd.f32 %v404_v5, %v403_v4  ;;  %v891_v4 = vmov 2   ;;  %v892_v5 = vmov 839922192   ;;  %p828_p4 = por %p827_p2, %p826_p10 }
  0x45   : > { %406 = vadd.xlane.f32.xlu0 %v405_v6  ;;  %v470_v6 = vunpack.c.l.s4 %v892_v5  ;;  %p829_p5 = pnand %p828_p4, %p822_p7 }
  0xd2   : > { %v407_v8 = vpop.xlane.xlu0 %406 }
  0xd3   : > { %v408_v9 = vmul.f32 0.00390625, %v407_v8 }
  0xd5   : > { %v410_v10 = vmul.f32 %v409_v7, %v408_v9  ;;  %v471_v7 = vunpack.c.0.s8 %v470_v6 }
  0xd7   : > { %v412_v11 = vsel %vm411_vm1, %v410_v10, 0.0  ;;  %v474_v8 = vsub.s32 %v471_v7, %v1079_v17 }
  0xd8   : > { %v413_v12 = vrot.slane %v412_v11, 4 }
  0xda   : > { %v414_v13 = vadd.f32 %v413_v12, %v412_v11 }
  0xdc   : > { %v415_v15 = vrot.slane %v414_v13, 2 }
  0xde   : > { %v416_v16 = vadd.f32 %v415_v15, %v414_v13  ;;  %v511_v15 = vsub.s32 4, %v1079_v17 }
  0xe0   : > { %v417_v18 = vrot.slane %v416_v16, 1 }
  0xe2   : > { %v418_v20 = vadd.f32 %v417_v18, %v416_v16 }
  0xe4   : > { %v420_v22 = vadd.f32 %v419_v19, %v418_v20 }
  0xe6   : > { %v425_v25 = vrot.slane %v420_v22, %v1085_v21 }
  0xe8   : > { %v433_v26 = vmul.f32 %v432_v23, %v425_v25  ;;  %v426_v27 = vmul.f32 %v425_v25, %v421_v24  ;;  %v533_v23 = vsub.s32 1, %v1079_v17  ;;  %v537_v24 = vsub.s32 5, %v1079_v17 }
  0xe9   : > { %v559_v25 = vsub.s32 2, %v1079_v17 }
  0xea   : > { %v434_v28 = vsel %vm411_vm1, %v433_v26, 0.0  ;;  %v427_v29 = vsel %vm411_vm1, %v426_v27, 0.0  ;;  %v563_v26 = vsub.s32 6, %v1079_v17 }
  0xeb   : > { %435 = vadd.xlane.f32.xlu1 %v434_v28  ;;  %428 = vadd.xlane.f32.xlu0 %v427_v29 }
 0x178   : > { %v436_v33 = vpop.xlane.xlu1 %435  ;;  %v429_v34 = vpop.xlane.xlu0 %428 }
 0x179   : > { %v438_v35 = vadd.f32 %v437_v31, %v436_v33  ;;  %v431_v36 = vadd.f32 %v430_v32, %v429_v34  ;;  %v585_v32 = vsub.s32 3, %v1079_v17  ;;  %v589_v33 = vsub.s32 7, %v1079_v17 }
 0x17b   : > { %v439_v37 = vmax.f32 %v431_v36, %v438_v35 }
 0x17d   : > { %v441_v38 = vsel %vm440_vm2, %v439_v37, -inf }
 0x17e   : > { %v442_v39 = vrot.slane %v441_v38, 4 }
 0x180   : > { %v443_v40 = vmax.f32 %v441_v38, %v442_v39 }
 0x182   : > { %v444_v41 = vrot.slane %v443_v40, 2 }
 0x184   : > { %v445_v42 = vmax.f32 %v443_v40, %v444_v41 }
 0x186   : > { %v446_v43 = vrot.slane %v445_v42, 1 }
 0x188   : > { %v447_v44 = vmax.f32 %v445_v42, %v446_v43 }
 0x18a   : > { %v448_v45 = vsub.f32 %v431_v36, %v447_v44  ;;  %v451_v46 = vsub.f32 %v438_v35, %v447_v44 }
 0x18c   : > { %v449_v47 = vmul.f32 1.442695, %v448_v45  ;;  %v452_v48 = vmul.f32 1.442695, %v451_v46 }
 0x18e   : > { %783 = vpow2.f32 %v449_v47 }
 0x18f   : > { %785 = vpow2.f32 %v452_v48 }
 0x198   : > { %v784_v49 = vpop.eup %783 }
 0x199   : > { %v786_v50 = vpop.eup %785 }
 0x19a   : > { %v454_v51 = vadd.f32 %v786_v50, %v784_v49 }
 0x19c   : > { %v455_v52 = vsel %vm440_vm2, %v454_v51, 0.0 }
 0x19d   : > { %v456_v53 = vrot.slane %v455_v52, 4 }
 0x19f   : > { %v457_v54 = vadd.f32 %v456_v53, %v455_v52 }
 0x1a1   : > { %v458_v55 = vrot.slane %v457_v54, 2 }
 0x1a3   : > { %v459_v56 = vadd.f32 %v458_v55, %v457_v54 }
 0x1a5   : > { %v460_v57 = vrot.slane %v459_v56, 1 }
 0x1a7   : > { %v461_v58 = vadd.f32 %v460_v57, %v459_v56 }
 0x1a9   : > { %787 = vrcp.f32 %v461_v58 }
 0x1b3   : > { %v788_v59 = vpop.eup %787 }
 0x1b4   : > { %v464_v60 = vmul.f32 %v788_v59, %v786_v50  ;;  %v463_v61 = vmul.f32 %v788_v59, %v784_v49 }
 0x1b6   : > { %480 = vperm.xlu0 %778, %v464_v60   ;;  %467 = vperm.xlu1 %777, %v463_v61  }
 0x1ba   : > { %501 = vperm.xlu1 %777, %v492_v62   ;;  %782 = vset.pattern.permute.xlu0 %v889_v63 }
 0x1be   : > { %496 = vperm.xlu1 %777, %v493_v2  }
 0x1c2   : > { %779 = vset.pattern.permute.xlu1 %v890_v3 }
 0x1c3   : > { %528 = vperm.xlu1 %779, %v492_v62  }
 0x1c7   : > { %780 = vset.pattern.permute.xlu1 %v891_v4 }
 0x1c8   : > { %554 = vperm.xlu1 %780, %v492_v62  }
 0x1cc   : > { %781 = vset.pattern.permute.xlu1 %v889_v63 }
 0x1cd   : > { %580 = vperm.xlu1 %781, %v492_v62  }
 0x235   : > { %v481_v9 = vpop.permute.xlu0 %480  ;;  %v468_v10 = vpop.permute.xlu1 %467 }
 0x236   : > { %v488_v11 = vrot.slane %v481_v9, %v474_v8  ;;  %v475_v12 = vrot.slane %v468_v10, %v474_v8 }
 0x238   : > { %v490_v13 = vmul.f32 %v488_v11, %v1069_v0  ;;  %v477_v14 = vmul.f32 %v475_v12, %v1071_v1 }
 0x239   : > { %v502_v16 = vpop.permute.xlu1 %501 }
 0x23a   : > { %v491_v18 = vadd.f32 %v490_v13, %v477_v14 }
 0x23c   : > { %v508_v19 = vrot.slane %v491_v18, %v1085_v21  ;;  %v512_v20 = vrot.slane %v491_v18, %v511_v15  ;;  %v534_v27 = vrot.slane %v491_v18, %v533_v23  ;;  %v538_v28 = vrot.slane %v491_v18, %v537_v24 }
 0x23d   : > { %v497_v22 = vpop.permute.xlu1 %496  ;;  %v560_v30 = vrot.slane %v491_v18, %v559_v25  ;;  %v564_v31 = vrot.slane %v491_v18, %v563_v26  ;;  %v586_v40 = vrot.slane %v491_v18, %v585_v32  ;;  %v590_v41 = vrot.slane %v491_v18, %v589_v33 }
 0x23e   : > { %v518_v0 = vrot.slane %v508_v19, %v1085_v21  ;;  %v522_v1 = vrot.slane %v512_v20, %v1085_v21  ;;  %v544_v36 = vrot.slane %v534_v27, %v533_v23  ;;  %v548_v37 = vrot.slane %v538_v28, %v533_v23 }
 0x23f   : > { %v570_v38 = vrot.slane %v560_v30, %v559_v25  ;;  %v574_v39 = vrot.slane %v564_v31, %v559_v25  ;;  %v596_v17 = vrot.slane %v586_v40, %v585_v32  ;;  %v600_v50 = vrot.slane %v590_v41, %v585_v32 }
 0x240   : > { %v523_v34 = vmul.f32 %v518_v0, %v502_v16  ;;  %v524_v35 = vmul.f32 %v522_v1, %v502_v16 }
 0x242   : > { %v529_v29 = vpop.permute.xlu1 %528  ;;  %v525_v42 = vadd.f32 %v523_v34, %v497_v22  ;;  %v526_v21 = vadd.f32 %v524_v35, %v497_v22 }
 0x243   : > { %v549_v43 = vmul.f32 %v544_v36, %v529_v29  ;;  %v550_v44 = vmul.f32 %v548_v37, %v529_v29 }
 0x245   : > { %v551_v48 = vadd.f32 %v549_v43, %v525_v42  ;;  %v552_v49 = vadd.f32 %v550_v44, %v526_v21 }
 0x247   : > { %v555_v45 = vpop.permute.xlu1 %554 }
 0x248   : > { %v575_v46 = vmul.f32 %v570_v38, %v555_v45  ;;  %v576_v47 = vmul.f32 %v574_v39, %v555_v45 }
 0x24a   : > { %v577_v52 = vadd.f32 %v575_v46, %v551_v48  ;;  %v578_v53 = vadd.f32 %v576_v47, %v552_v49 }
 0x24c   : > { %v581_v51 = vpop.permute.xlu1 %580 }
 0x24d   : > { %v601_v54 = vmul.f32 %v596_v17, %v581_v51  ;;  %v602_v55 = vmul.f32 %v600_v50, %v581_v51 }
 0x24f   : > { %v603_v56 = vadd.f32 %v601_v54, %v577_v52  ;;  %v604_v57 = vadd.f32 %v602_v55, %v578_v53 }
 0x251   : > { %v607_v58 = vcombine.low %v603_v56, %v604_v57 }
 0x253   : > { %609 = vst [vmem:[%s390_s30] sm:$0xff] %v607_v58 }
 0x254   : > { %832 = shalt.err (!%p829_p5)
}
 0x255   : > { %s833_s28 = scalar_lea.hbm %s1129_s29, 128  ;;  %s837_s30 = scalar_lea.hbm %s1183_s10, 256 }
 0x256   : > { %p834_p8 = scmp.ne.s32.totalorder %s1129_s29, %s833_s28  ;;  %p838_p1 = scmp.lt.u32.totalorder %s1129_s29, %s1183_s10 }
 0x257   : > { %p839_p3 = scmp.lt.u32.totalorder %s837_s30, %s833_s28  ;;  %p841_p6 = scmp.lt.u32.totalorder %s833_s28, %s1129_s29 }
 0x258   : > { %p835_p9 = pnand %p834_p8, %p1193_p12 }
 0x259   : > { %p840_p11 = por %p839_p3, %p838_p1 }
 0x25a   : > { %p836_p0 = pneg %p835_p9 }
 0x25b   : > { %p842_p13 = por %p841_p6, %p840_p11 }
 0x25d   : > { %p843_p7 = pnand %p842_p13, %p836_p0 }
 0x25f   : > { %846 = shalt.err (!%p843_p7)
}
 0x260   : > { %728 = dma.vmem_to_hbm [thread:$0]  (%p1193_p12), %s1131_s27, 128, %s1129_s29, %s611_s22  }
 0x261 PF: > { %s637_s18 = sand.u32 1, %s873_s13   ;;  %p1194_p10 = scmp.ne.s32.totalorder %s1189_s26, 0 }
 0x262   : > { %p1195_p2 = scmp.ge.s32.totalorder %s885_s16, 2  ;;  %s638_s17 = scalar_lea.sflag [#allocation4], %s637_s18 }
 0x264   : > { %p735_p4 = pnand %p1195_p2, %p1194_p10 }
 0x266   : > { %868 = dma.done.wait (!%p735_p4), %s638_s17, 128  }
 0x267   : > { %870 = vsyncadd (!%p735_p4), %s638_s17, 4294967168  ;;  %s1196_s11 = sld [smem:[#allocation8_spill]]  ;;  %p23_p5 = scmp.ge.s32.totalorder %s974_s19, 4  }
 0x268   : > { %s1197_s13 = smov %s877_s14  ;;  %s1198_s14 = smov %s881_s15 }
 0x269   : > { %s1200_s16 = smov %s974_s19  ;;  %25 = sbr.rel (!%p23_p5) target bundleno = 5 (0x5), region = 108 }
 0x26d   : > { %s1199_s15 = smov %s1196_s11 }
 0x270   :  { %643 = vsyncpa [#allocation3], 1 }
 0x271   :  { %645 = vsyncpa [#allocation3 + $0x1], 1 }
 0x272   :  { %646 = vsyncpa [#allocation4], 1 }
 0x273   :  { %648 = vsyncpa [#allocation4 + $0x1], 1 }

</bundles_post_ra>
